<compile_context>
chip_gen: v7x
topology: tpu7x:2x2x1
jax: 0.10.0
libtpu: 0.0.40
codegen_flags: <defaults>
</compile_context>

<pallas_src>
import functools

import jax
import jax.numpy as jnp
from jax import lax
from jax.experimental import pallas as pl
from jax.experimental.pallas import tpu as pltpu

SMOOTH = 1e-5

# Target HBM bytes per grid step for the two input blocks together.
# Double-buffering doubles the resident footprint (~8 MiB for f32 inputs).
_STEP_INPUT_BUDGET = 4 * 1024 * 1024
_MAX_LANE_TILE = 512            # lane tile (last dim), multiple of 128
_VMEM_CAP = 48 * 1024 * 1024    # headroom under v7x's 64 MiB physical VMEM


def _bce_dice_kernel(pre_ref, tgt_ref, out_ref, acc_ref, *, C, T):
    """Process one (1, C, S, L) tile of logits/targets.

    acc_ref : VMEM (5, S, L) f32 elementwise accumulators (per sample):
        [0] BCE-with-logits terms     [1] -t * log_softmax(x) terms
        [2] sigmoid(x) * t            [3] sigmoid(x)            [4] t
    out_ref : (1, 8, 128) block of the (N, 8, 128) partials output; sublane r
        holds (broadcast over all lanes) the per-sample sum of accumulator r.
    """
    s = pl.program_id(1)

    @pl.when(s == 0)
    def _init_sample():
        acc_ref[...] = jnp.zeros_like(acc_ref)

    # Channel max for the stable log-softmax: channel axis is leading /
    # untiled, so this is a chain of plain per-vreg maxes on the VPU.
    m = pre_ref[0, 0].astype(jnp.float32)
    for c in range(1, C):
        m = jnp.maximum(m, pre_ref[0, c].astype(jnp.float32))

    zero = jnp.zeros_like(m)
    esum = zero
    bce_sl = zero
    inter_sl = zero
    sig_sl = zero
    tgt_sl = zero
    tx_sl = zero
    for c in range(C):
        x = pre_ref[0, c].astype(jnp.float32)        # (S, L)
        t = tgt_ref[0, c].astype(jnp.float32)        # (S, L)
        e = jnp.exp(-jnp.abs(x))                     # reused: BCE term + sigmoid
        bce_sl = bce_sl + (jnp.maximum(x, 0.0) - x * t + jnp.log1p(e))
        inv = 1.0 / (1.0 + e)                        # exact divide (Dice accuracy)
        sig = jnp.where(x >= 0.0, inv, e * inv)      # sigmoid(x)
        inter_sl = inter_sl + sig * t
        sig_sl = sig_sl + sig
        tgt_sl = tgt_sl + t
        tx_sl = tx_sl + t * x
        esum = esum + jnp.exp(x - m)

    lse = m + jnp.log(esum)                          # (S, L)
    ce_sl = tgt_sl * lse - tx_sl                     # sum_c t_c * (lse - x_c)

    # Vector-shaped accumulation: no per-step cross-lane reduce, no scalar
    # round-trips, no serial scalar dependency between grid steps.
    acc_ref[0] += bce_sl
    acc_ref[1] += ce_sl
    acc_ref[2] += inter_sl
    acc_ref[3] += sig_sl
    acc_ref[4] += tgt_sl

    # Per-sample epilogue: 5 full reductions + one lane-dense (8,128) store.
    @pl.when(s == T - 1)
    def _finish_sample():
        bce_s = jnp.sum(acc_ref[0])
        ce_s = jnp.sum(acc_ref[1])
        inter_s = jnp.sum(acc_ref[2])
        sig_s = jnp.sum(acc_ref[3])
        tgt_s = jnp.sum(acc_ref[4])
        sub = lax.broadcasted_iota(jnp.int32, (8, 128), 0)

        def row(val, r):
            return jnp.where(sub == r, jnp.broadcast_to(val, (8, 128)), 0.0)

        out_ref[0] = (row(bce_s, 0) + row(ce_s, 1) + row(inter_s, 2)
                      + row(sig_s, 3) + row(tgt_s, 4))


def _choose_tiles(C, HW, step_bytes_per_elem, sublane_mult):
    """Pick (L, S, T): lane tile, sublane tile, number of spatial grid steps."""
    if HW % 128 == 0:
        L = 128
        while L * 2 <= _MAX_LANE_TILE and HW % (L * 2) == 0:
            L *= 2
    else:
        # Odd spatial sizes fall back to one untiled lane block (legal because
        # the block dim equals the full array dim).
        L = HW
    s_total = HW // L

    best = None
    cand = sublane_mult
    while cand <= s_total:
        if (s_total % cand == 0
                and C * cand * L * step_bytes_per_elem <= _STEP_INPUT_BUDGET):
            best = cand
        cand += sublane_mult
    if best is None:
        if s_total % sublane_mult == 0:
            best = sublane_mult          # smallest legal tile (budget exceeded)
        else:
            best = s_total               # tiny / awkward shapes: one full block
    return L, best, s_total // best


def bce_dice_loss(pre, target):
    """pre, target: (N, C, H, W) logits / float targets. Returns scalar loss."""
    assert pre.shape == target.shape and pre.ndim == 4
    N, C, H, W = pre.shape
    HW = H * W

    itemsize_p = pre.dtype.itemsize
    itemsize_t = target.dtype.itemsize
    sublane_mult = max(32 // min(itemsize_p, 4), 32 // min(itemsize_t, 4), 8)
    L, S, T = _choose_tiles(C, HW, itemsize_p + itemsize_t, sublane_mult)

    # Stream at the caller's dtype (bf16 halves HBM bytes); upcast in-kernel.
    x = pre.reshape(N, C, HW // L, L)
    t = target.reshape(N, C, HW // L, L)

    # VMEM budget: double-buffered input blocks + accumulators + allowance for
    # compiler-managed vector temporaries, with ~50% headroom, capped for v7x.
    block_elems = C * S * L
    needed = (2 * block_elems * (itemsize_p + itemsize_t)   # 2x-buffered inputs
              + 5 * S * L * 4                               # accumulators
              + 20 * S * L * 4                              # vector temporaries
              + 2 * 8 * 128 * 4)                            # output block
    vmem_limit = int(min(max(needed * 3 // 2, 16 * 1024 * 1024), _VMEM_CAP))

    kernel = functools.partial(_bce_dice_kernel, C=C, T=T)
    in_spec = pl.BlockSpec((1, C, S, L), lambda n, s: (n, 0, s, 0))

    partials = pl.pallas_call(
        kernel,
        out_shape=jax.ShapeDtypeStruct((N, 8, 128), jnp.float32),
        grid_spec=pltpu.PrefetchScalarGridSpec(
            num_scalar_prefetch=0,
            grid=(N, T),
            in_specs=[in_spec, in_spec],
            out_specs=pl.BlockSpec((1, 8, 128), lambda n, s: (n, 0, 0)),
            scratch_shapes=[pltpu.VMEM((5, S, L), jnp.float32)]),
        compiler_params=pltpu.CompilerParams(
            # Per-sample partials make the batch axis safely megacore-parallel
            # (2 TensorCores on v7x); the spatial reduction axis stays serial.
            dimension_semantics=("parallel", "arbitrary"),
            vmem_limit_bytes=vmem_limit),
    )(x, t)

    # Tiny final combine in plain JAX (a few dozen flops on (N,)-vectors).
    p = partials[:, :5, 0]                              # (N, 5)
    bce = jnp.sum(p[:, 0]) / (N * C * HW)               # mean over all elements
    logp = jnp.sum(p[:, 1]) / (N * HW)                  # CE mean over N*H*W
    prob = jnp.exp(-logp)
    fl = (1.0 - prob) * logp                            # focal term, gamma=1
    dice_coef = (2.0 * p[:, 2] + SMOOTH) / (p[:, 3] + p[:, 4] + SMOOTH)
    dice = 1.0 - jnp.sum(dice_coef) / N
    return 0.5 * bce + 0.5 * fl + dice


def reference_bce_dice_loss(pre, target):
    """Pure-JAX reference mirroring the PyTorch module semantics."""
    x = pre.astype(jnp.float32)
    t = target.astype(jnp.float32)

    bce = jnp.mean(jnp.maximum(x, 0.0) - x * t + jnp.log1p(jnp.exp(-jnp.abs(x))))

    logsm = jax.nn.log_softmax(x, axis=1)
    logp = jnp.mean(jnp.sum(-t * logsm, axis=1))
    p = jnp.exp(-logp)
    fl = (1.0 - p) * logp

    sig = jax.nn.sigmoid(x)
    num = x.shape[0]
    s2 = sig.reshape(num, -1)
    t2 = t.reshape(num, -1)
    inter = jnp.sum(s2 * t2, axis=1)
    dice_coef = (2.0 * inter + SMOOTH) / (jnp.sum(s2, axis=1)
                                          + jnp.sum(t2, axis=1) + SMOOTH)
    dice = 1.0 - jnp.sum(dice_coef) / num
    return 0.5 * bce + 0.5 * fl + dice


if __name__ == "__main__":
    N, C, H, W = 2, 4, 16, 16

    key = jax.random.PRNGKey(0)
    k_pre, k_tgt = jax.random.split(key)
    pre = jax.random.normal(k_pre, (N, C, H, W), jnp.float32)            # logits
    target = (jax.random.uniform(k_tgt, (N, C, H, W)) > 0.5).astype(jnp.float32)

    loss = bce_dice_loss(pre, target)
    loss = jax.block_until_ready(loss)

    ref = reference_bce_dice_loss(pre, target)
    assert loss.shape == ()
    assert jnp.allclose(loss, ref, rtol=1e-4, atol=1e-4), (
        float(loss), float(ref), float(jnp.abs(loss - ref)))

    print("KERNEL_OK")
</pallas_src>

<mosaic_0001>
module attributes {stable_mosaic.version = 11 : i64} {
  func.func @_bce_dice_kernel(%arg0: i32, %arg1: i32, %arg2: memref<1x4x1x256xf32, #tpu.memory_space<vmem>>, %arg3: memref<1x4x1x256xf32, #tpu.memory_space<vmem>>, %arg4: memref<1x8x128xf32, #tpu.memory_space<vmem>>, %arg5: memref<5x1x256xf32, #tpu.memory_space<vmem>>) attributes {dimension_semantics = [#tpu.dimension_semantics<parallel>, #tpu.dimension_semantics<arbitrary>], iteration_bounds = array<i64: 2, 1>, scalar_prefetch = 0 : i64, scratch_operands = 1 : i64, tpu.core_type = #tpu.core_type<tc>, window_params = [{transform_indices = @transform_0, window_bounds = array<i64: 1, 4, 1, 256>}, {transform_indices = @transform_1, window_bounds = array<i64: 1, 4, 1, 256>}, {transform_indices = @transform_2, window_bounds = array<i64: 1, 8, 128>}]} {
    %c0_i32 = arith.constant 0 : i32
    %0 = arith.cmpi eq, %arg1, %c0_i32 : i32
    %1 = arith.extui %0 : i1 to i32
    %c0_i32_0 = arith.constant 0 : i32
    %2 = arith.cmpi ne, %1, %c0_i32_0 : i32
    scf.if %2 {
      %cst_96 = arith.constant 0.000000e+00 : f32
      %180 = vector.broadcast %cst_96 : f32 to vector<5x1x256xf32>
      %c0_97 = arith.constant 0 : index
      %c0_98 = arith.constant 0 : index
      %c0_99 = arith.constant 0 : index
      %181 = vector.load %arg5[%c0_97, %c0_98, %c0_99] : memref<5x1x256xf32, #tpu.memory_space<vmem>>, vector<5x1x256xf32>
      tpu.vector_store %arg5[%c0_97, %c0_98, %c0_99], %180 {strides = array<i32>} : memref<5x1x256xf32, #tpu.memory_space<vmem>>, vector<5x1x256xf32>,
    } else {
    }
    %c0 = arith.constant 0 : index
    %c0_1 = arith.constant 0 : index
    %c0_2 = arith.constant 0 : index
    %c0_3 = arith.constant 0 : index
    %3 = vector.load %arg2[%c0, %c0_1, %c0_2, %c0_3] : memref<1x4x1x256xf32, #tpu.memory_space<vmem>>, vector<1x1x1x256xf32>
    %4 = vector.shape_cast %3 : vector<1x1x1x256xf32> to vector<1x256xf32>
    %c0_4 = arith.constant 0 : index
    %c1 = arith.constant 1 : index
    %c0_5 = arith.constant 0 : index
    %c0_6 = arith.constant 0 : index
    %5 = vector.load %arg2[%c0_4, %c1, %c0_5, %c0_6] : memref<1x4x1x256xf32, #tpu.memory_space<vmem>>, vector<1x1x1x256xf32>
    %6 = vector.shape_cast %5 : vector<1x1x1x256xf32> to vector<1x256xf32>
    %7 = arith.maximumf %4, %6 : vector<1x256xf32>
    %c0_7 = arith.constant 0 : index
    %c2 = arith.constant 2 : index
    %c0_8 = arith.constant 0 : index
    %c0_9 = arith.constant 0 : index
    %8 = vector.load %arg2[%c0_7, %c2, %c0_8, %c0_9] : memref<1x4x1x256xf32, #tpu.memory_space<vmem>>, vector<1x1x1x256xf32>
    %9 = vector.shape_cast %8 : vector<1x1x1x256xf32> to vector<1x256xf32>
    %10 = arith.maximumf %7, %9 : vector<1x256xf32>
    %c0_10 = arith.constant 0 : index
    %c3 = arith.constant 3 : index
    %c0_11 = arith.constant 0 : index
    %c0_12 = arith.constant 0 : index
    %11 = vector.load %arg2[%c0_10, %c3, %c0_11, %c0_12] : memref<1x4x1x256xf32, #tpu.memory_space<vmem>>, vector<1x1x1x256xf32>
    %12 = vector.shape_cast %11 : vector<1x1x1x256xf32> to vector<1x256xf32>
    %13 = arith.maximumf %10, %12 : vector<1x256xf32>
    %cst = arith.constant 0.000000e+00 : f32
    %14 = vector.broadcast %cst : f32 to vector<1x256xf32>
    %c0_13 = arith.constant 0 : index
    %c0_14 = arith.constant 0 : index
    %c0_15 = arith.constant 0 : index
    %c0_16 = arith.constant 0 : index
    %15 = vector.load %arg2[%c0_13, %c0_14, %c0_15, %c0_16] : memref<1x4x1x256xf32, #tpu.memory_space<vmem>>, vector<1x1x1x256xf32>
    %16 = vector.shape_cast %15 : vector<1x1x1x256xf32> to vector<1x256xf32>
    %c0_17 = arith.constant 0 : index
    %c0_18 = arith.constant 0 : index
    %c0_19 = arith.constant 0 : index
    %c0_20 = arith.constant 0 : index
    %17 = vector.load %arg3[%c0_17, %c0_18, %c0_19, %c0_20] : memref<1x4x1x256xf32, #tpu.memory_space<vmem>>, vector<1x1x1x256xf32>
    %18 = vector.shape_cast %17 : vector<1x1x1x256xf32> to vector<1x256xf32>
    %19 = math.absf %16 : vector<1x256xf32>
    %cst_21 = arith.constant 0.000000e+00 : f32
    %20 = vector.broadcast %cst_21 : f32 to vector<1x256xf32>
    %21 = arith.subf %20, %19 : vector<1x256xf32>
    %22 = math.exp %21 : vector<1x256xf32>
    %cst_22 = arith.constant 0.000000e+00 : f32
    %23 = vector.broadcast %cst_22 : f32 to vector<1x256xf32>
    %24 = arith.maximumf %16, %23 : vector<1x256xf32>
    %25 = arith.mulf %16, %18 : vector<1x256xf32>
    %26 = arith.subf %24, %25 : vector<1x256xf32>
    %27 = math.log1p %22 : vector<1x256xf32>
    %28 = arith.addf %26, %27 : vector<1x256xf32>
    %29 = arith.addf %14, %28 : vector<1x256xf32>
    %cst_23 = arith.constant 1.000000e+00 : f32
    %30 = vector.broadcast %cst_23 : f32 to vector<1x256xf32>
    %31 = arith.addf %30, %22 : vector<1x256xf32>
    %cst_24 = arith.constant 1.000000e+00 : f32
    %32 = vector.broadcast %cst_24 : f32 to vector<1x256xf32>
    %33 = arith.divf %32, %31 : vector<1x256xf32>
    %cst_25 = arith.constant 0.000000e+00 : f32
    %34 = vector.broadcast %cst_25 : f32 to vector<1x256xf32>
    %35 = arith.cmpf oge, %16, %34 : vector<1x256xf32>
    %36 = arith.mulf %22, %33 : vector<1x256xf32>
    %37 = arith.select %35, %33, %36 : vector<1x256xi1>, vector<1x256xf32>
    %38 = arith.mulf %37, %18 : vector<1x256xf32>
    %39 = arith.addf %14, %38 : vector<1x256xf32>
    %40 = arith.addf %14, %37 : vector<1x256xf32>
    %41 = arith.addf %14, %18 : vector<1x256xf32>
    %42 = arith.mulf %18, %16 : vector<1x256xf32>
    %43 = arith.addf %14, %42 : vector<1x256xf32>
    %44 = arith.subf %16, %13 : vector<1x256xf32>
    %45 = math.exp %44 : vector<1x256xf32>
    %46 = arith.addf %14, %45 : vector<1x256xf32>
    %c0_26 = arith.constant 0 : index
    %c1_27 = arith.constant 1 : index
    %c0_28 = arith.constant 0 : index
    %c0_29 = arith.constant 0 : index
    %47 = vector.load %arg2[%c0_26, %c1_27, %c0_28, %c0_29] : memref<1x4x1x256xf32, #tpu.memory_space<vmem>>, vector<1x1x1x256xf32>
    %48 = vector.shape_cast %47 : vector<1x1x1x256xf32> to vector<1x256xf32>
    %c0_30 = arith.constant 0 : index
    %c1_31 = arith.constant 1 : index
    %c0_32 = arith.constant 0 : index
    %c0_33 = arith.constant 0 : index
    %49 = vector.load %arg3[%c0_30, %c1_31, %c0_32, %c0_33] : memref<1x4x1x256xf32, #tpu.memory_space<vmem>>, vector<1x1x1x256xf32>
    %50 = vector.shape_cast %49 : vector<1x1x1x256xf32> to vector<1x256xf32>
    %51 = math.absf %48 : vector<1x256xf32>
    %cst_34 = arith.constant 0.000000e+00 : f32
    %52 = vector.broadcast %cst_34 : f32 to vector<1x256xf32>
    %53 = arith.subf %52, %51 : vector<1x256xf32>
    %54 = math.exp %53 : vector<1x256xf32>
    %cst_35 = arith.constant 0.000000e+00 : f32
    %55 = vector.broadcast %cst_35 : f32 to vector<1x256xf32>
    %56 = arith.maximumf %48, %55 : vector<1x256xf32>
    %57 = arith.mulf %48, %50 : vector<1x256xf32>
    %58 = arith.subf %56, %57 : vector<1x256xf32>
    %59 = math.log1p %54 : vector<1x256xf32>
    %60 = arith.addf %58, %59 : vector<1x256xf32>
    %61 = arith.addf %29, %60 : vector<1x256xf32>
    %cst_36 = arith.constant 1.000000e+00 : f32
    %62 = vector.broadcast %cst_36 : f32 to vector<1x256xf32>
    %63 = arith.addf %62, %54 : vector<1x256xf32>
    %cst_37 = arith.constant 1.000000e+00 : f32
    %64 = vector.broadcast %cst_37 : f32 to vector<1x256xf32>
    %65 = arith.divf %64, %63 : vector<1x256xf32>
    %cst_38 = arith.constant 0.000000e+00 : f32
    %66 = vector.broadcast %cst_38 : f32 to vector<1x256xf32>
    %67 = arith.cmpf oge, %48, %66 : vector<1x256xf32>
    %68 = arith.mulf %54, %65 : vector<1x256xf32>
    %69 = arith.select %67, %65, %68 : vector<1x256xi1>, vector<1x256xf32>
    %70 = arith.mulf %69, %50 : vector<1x256xf32>
    %71 = arith.addf %39, %70 : vector<1x256xf32>
    %72 = arith.addf %40, %69 : vector<1x256xf32>
    %73 = arith.addf %41, %50 : vector<1x256xf32>
    %74 = arith.mulf %50, %48 : vector<1x256xf32>
    %75 = arith.addf %43, %74 : vector<1x256xf32>
    %76 = arith.subf %48, %13 : vector<1x256xf32>
    %77 = math.exp %76 : vector<1x256xf32>
    %78 = arith.addf %46, %77 : vector<1x256xf32>
    %c0_39 = arith.constant 0 : index
    %c2_40 = arith.constant 2 : index
    %c0_41 = arith.constant 0 : index
    %c0_42 = arith.constant 0 : index
    %79 = vector.load %arg2[%c0_39, %c2_40, %c0_41, %c0_42] : memref<1x4x1x256xf32, #tpu.memory_space<vmem>>, vector<1x1x1x256xf32>
    %80 = vector.shape_cast %79 : vector<1x1x1x256xf32> to vector<1x256xf32>
    %c0_43 = arith.constant 0 : index
    %c2_44 = arith.constant 2 : index
    %c0_45 = arith.constant 0 : index
    %c0_46 = arith.constant 0 : index
    %81 = vector.load %arg3[%c0_43, %c2_44, %c0_45, %c0_46] : memref<1x4x1x256xf32, #tpu.memory_space<vmem>>, vector<1x1x1x256xf32>
    %82 = vector.shape_cast %81 : vector<1x1x1x256xf32> to vector<1x256xf32>
    %83 = math.absf %80 : vector<1x256xf32>
    %cst_47 = arith.constant 0.000000e+00 : f32
    %84 = vector.broadcast %cst_47 : f32 to vector<1x256xf32>
    %85 = arith.subf %84, %83 : vector<1x256xf32>
    %86 = math.exp %85 : vector<1x256xf32>
    %cst_48 = arith.constant 0.000000e+00 : f32
    %87 = vector.broadcast %cst_48 : f32 to vector<1x256xf32>
    %88 = arith.maximumf %80, %87 : vector<1x256xf32>
    %89 = arith.mulf %80, %82 : vector<1x256xf32>
    %90 = arith.subf %88, %89 : vector<1x256xf32>
    %91 = math.log1p %86 : vector<1x256xf32>
    %92 = arith.addf %90, %91 : vector<1x256xf32>
    %93 = arith.addf %61, %92 : vector<1x256xf32>
    %cst_49 = arith.constant 1.000000e+00 : f32
    %94 = vector.broadcast %cst_49 : f32 to vector<1x256xf32>
    %95 = arith.addf %94, %86 : vector<1x256xf32>
    %cst_50 = arith.constant 1.000000e+00 : f32
    %96 = vector.broadcast %cst_50 : f32 to vector<1x256xf32>
    %97 = arith.divf %96, %95 : vector<1x256xf32>
    %cst_51 = arith.constant 0.000000e+00 : f32
    %98 = vector.broadcast %cst_51 : f32 to vector<1x256xf32>
    %99 = arith.cmpf oge, %80, %98 : vector<1x256xf32>
    %100 = arith.mulf %86, %97 : vector<1x256xf32>
    %101 = arith.select %99, %97, %100 : vector<1x256xi1>, vector<1x256xf32>
    %102 = arith.mulf %101, %82 : vector<1x256xf32>
    %103 = arith.addf %71, %102 : vector<1x256xf32>
    %104 = arith.addf %72, %101 : vector<1x256xf32>
    %105 = arith.addf %73, %82 : vector<1x256xf32>
    %106 = arith.mulf %82, %80 : vector<1x256xf32>
    %107 = arith.addf %75, %106 : vector<1x256xf32>
    %108 = arith.subf %80, %13 : vector<1x256xf32>
    %109 = math.exp %108 : vector<1x256xf32>
    %110 = arith.addf %78, %109 : vector<1x256xf32>
    %c0_52 = arith.constant 0 : index
    %c3_53 = arith.constant 3 : index
    %c0_54 = arith.constant 0 : index
    %c0_55 = arith.constant 0 : index
    %111 = vector.load %arg2[%c0_52, %c3_53, %c0_54, %c0_55] : memref<1x4x1x256xf32, #tpu.memory_space<vmem>>, vector<1x1x1x256xf32>
    %112 = vector.shape_cast %111 : vector<1x1x1x256xf32> to vector<1x256xf32>
    %c0_56 = arith.constant 0 : index
    %c3_57 = arith.constant 3 : index
    %c0_58 = arith.constant 0 : index
    %c0_59 = arith.constant 0 : index
    %113 = vector.load %arg3[%c0_56, %c3_57, %c0_58, %c0_59] : memref<1x4x1x256xf32, #tpu.memory_space<vmem>>, vector<1x1x1x256xf32>
    %114 = vector.shape_cast %113 : vector<1x1x1x256xf32> to vector<1x256xf32>
    %115 = math.absf %112 : vector<1x256xf32>
    %cst_60 = arith.constant 0.000000e+00 : f32
    %116 = vector.broadcast %cst_60 : f32 to vector<1x256xf32>
    %117 = arith.subf %116, %115 : vector<1x256xf32>
    %118 = math.exp %117 : vector<1x256xf32>
    %cst_61 = arith.constant 0.000000e+00 : f32
    %119 = vector.broadcast %cst_61 : f32 to vector<1x256xf32>
    %120 = arith.maximumf %112, %119 : vector<1x256xf32>
    %121 = arith.mulf %112, %114 : vector<1x256xf32>
    %122 = arith.subf %120, %121 : vector<1x256xf32>
    %123 = math.log1p %118 : vector<1x256xf32>
    %124 = arith.addf %122, %123 : vector<1x256xf32>
    %125 = arith.addf %93, %124 : vector<1x256xf32>
    %cst_62 = arith.constant 1.000000e+00 : f32
    %126 = vector.broadcast %cst_62 : f32 to vector<1x256xf32>
    %127 = arith.addf %126, %118 : vector<1x256xf32>
    %cst_63 = arith.constant 1.000000e+00 : f32
    %128 = vector.broadcast %cst_63 : f32 to vector<1x256xf32>
    %129 = arith.divf %128, %127 : vector<1x256xf32>
    %cst_64 = arith.constant 0.000000e+00 : f32
    %130 = vector.broadcast %cst_64 : f32 to vector<1x256xf32>
    %131 = arith.cmpf oge, %112, %130 : vector<1x256xf32>
    %132 = arith.mulf %118, %129 : vector<1x256xf32>
    %133 = arith.select %131, %129, %132 : vector<1x256xi1>, vector<1x256xf32>
    %134 = arith.mulf %133, %114 : vector<1x256xf32>
    %135 = arith.addf %103, %134 : vector<1x256xf32>
    %136 = arith.addf %104, %133 : vector<1x256xf32>
    %137 = arith.addf %105, %114 : vector<1x256xf32>
    %138 = arith.mulf %114, %112 : vector<1x256xf32>
    %139 = arith.addf %107, %138 : vector<1x256xf32>
    %140 = arith.subf %112, %13 : vector<1x256xf32>
    %141 = math.exp %140 : vector<1x256xf32>
    %142 = arith.addf %110, %141 : vector<1x256xf32>
    %143 = math.log %142 : vector<1x256xf32>
    %144 = arith.addf %13, %143 : vector<1x256xf32>
    %145 = arith.mulf %137, %144 : vector<1x256xf32>
    %146 = arith.subf %145, %139 : vector<1x256xf32>
    %c0_65 = arith.constant 0 : index
    %c0_66 = arith.constant 0 : index
    %c0_67 = arith.constant 0 : index
    %147 = vector.load %arg5[%c0_65, %c0_66, %c0_67] : memref<5x1x256xf32, #tpu.memory_space<vmem>>, vector<1x1x256xf32>
    %148 = vector.shape_cast %147 : vector<1x1x256xf32> to vector<1x256xf32>
    %149 = arith.addf %148, %125 : vector<1x256xf32>
    %c0_68 = arith.constant 0 : index
    %c0_69 = arith.constant 0 : index
    %c0_70 = arith.constant 0 : index
    %150 = vector.load %arg5[%c0_68, %c0_69, %c0_70] : memref<5x1x256xf32, #tpu.memory_space<vmem>>, vector<1x1x256xf32>
    %151 = vector.shape_cast %150 : vector<1x1x256xf32> to vector<1x256xf32>
    %152 = vector.shape_cast %149 : vector<1x256xf32> to vector<1x1x256xf32>
    tpu.vector_store %arg5[%c0_68, %c0_69, %c0_70], %152 {strides = array<i32>} : memref<5x1x256xf32, #tpu.memory_space<vmem>>, vector<1x1x256xf32>,
    %c1_71 = arith.constant 1 : index
    %c0_72 = arith.constant 0 : index
    %c0_73 = arith.constant 0 : index
    %153 = vector.load %arg5[%c1_71, %c0_72, %c0_73] : memref<5x1x256xf32, #tpu.memory_space<vmem>>, vector<1x1x256xf32>
    %154 = vector.shape_cast %153 : vector<1x1x256xf32> to vector<1x256xf32>
    %155 = arith.addf %154, %146 : vector<1x256xf32>
    %c1_74 = arith.constant 1 : index
    %c0_75 = arith.constant 0 : index
    %c0_76 = arith.constant 0 : index
    %156 = vector.load %arg5[%c1_74, %c0_75, %c0_76] : memref<5x1x256xf32, #tpu.memory_space<vmem>>, vector<1x1x256xf32>
    %157 = vector.shape_cast %156 : vector<1x1x256xf32> to vector<1x256xf32>
    %158 = vector.shape_cast %155 : vector<1x256xf32> to vector<1x1x256xf32>
    tpu.vector_store %arg5[%c1_74, %c0_75, %c0_76], %158 {strides = array<i32>} : memref<5x1x256xf32, #tpu.memory_space<vmem>>, vector<1x1x256xf32>,
    %c2_77 = arith.constant 2 : index
    %c0_78 = arith.constant 0 : index
    %c0_79 = arith.constant 0 : index
    %159 = vector.load %arg5[%c2_77, %c0_78, %c0_79] : memref<5x1x256xf32, #tpu.memory_space<vmem>>, vector<1x1x256xf32>
    %160 = vector.shape_cast %159 : vector<1x1x256xf32> to vector<1x256xf32>
    %161 = arith.addf %160, %135 : vector<1x256xf32>
    %c2_80 = arith.constant 2 : index
    %c0_81 = arith.constant 0 : index
    %c0_82 = arith.constant 0 : index
    %162 = vector.load %arg5[%c2_80, %c0_81, %c0_82] : memref<5x1x256xf32, #tpu.memory_space<vmem>>, vector<1x1x256xf32>
    %163 = vector.shape_cast %162 : vector<1x1x256xf32> to vector<1x256xf32>
    %164 = vector.shape_cast %161 : vector<1x256xf32> to vector<1x1x256xf32>
    tpu.vector_store %arg5[%c2_80, %c0_81, %c0_82], %164 {strides = array<i32>} : memref<5x1x256xf32, #tpu.memory_space<vmem>>, vector<1x1x256xf32>,
    %c3_83 = arith.constant 3 : index
    %c0_84 = arith.constant 0 : index
    %c0_85 = arith.constant 0 : index
    %165 = vector.load %arg5[%c3_83, %c0_84, %c0_85] : memref<5x1x256xf32, #tpu.memory_space<vmem>>, vector<1x1x256xf32>
    %166 = vector.shape_cast %165 : vector<1x1x256xf32> to vector<1x256xf32>
    %167 = arith.addf %166, %136 : vector<1x256xf32>
    %c3_86 = arith.constant 3 : index
    %c0_87 = arith.constant 0 : index
    %c0_88 = arith.constant 0 : index
    %168 = vector.load %arg5[%c3_86, %c0_87, %c0_88] : memref<5x1x256xf32, #tpu.memory_space<vmem>>, vector<1x1x256xf32>
    %169 = vector.shape_cast %168 : vector<1x1x256xf32> to vector<1x256xf32>
    %170 = vector.shape_cast %167 : vector<1x256xf32> to vector<1x1x256xf32>
    tpu.vector_store %arg5[%c3_86, %c0_87, %c0_88], %170 {strides = array<i32>} : memref<5x1x256xf32, #tpu.memory_space<vmem>>, vector<1x1x256xf32>,
    %c4 = arith.constant 4 : index
    %c0_89 = arith.constant 0 : index
    %c0_90 = arith.constant 0 : index
    %171 = vector.load %arg5[%c4, %c0_89, %c0_90] : memref<5x1x256xf32, #tpu.memory_space<vmem>>, vector<1x1x256xf32>
    %172 = vector.shape_cast %171 : vector<1x1x256xf32> to vector<1x256xf32>
    %173 = arith.addf %172, %137 : vector<1x256xf32>
    %c4_91 = arith.constant 4 : index
    %c0_92 = arith.constant 0 : index
    %c0_93 = arith.constant 0 : index
    %174 = vector.load %arg5[%c4_91, %c0_92, %c0_93] : memref<5x1x256xf32, #tpu.memory_space<vmem>>, vector<1x1x256xf32>
    %175 = vector.shape_cast %174 : vector<1x1x256xf32> to vector<1x256xf32>
    %176 = vector.shape_cast %173 : vector<1x256xf32> to vector<1x1x256xf32>
    tpu.vector_store %arg5[%c4_91, %c0_92, %c0_93], %176 {strides = array<i32>} : memref<5x1x256xf32, #tpu.memory_space<vmem>>, vector<1x1x256xf32>,
    %c0_i32_94 = arith.constant 0 : i32
    %177 = arith.cmpi eq, %arg1, %c0_i32_94 : i32
    %178 = arith.extui %177 : i1 to i32
    %c0_i32_95 = arith.constant 0 : i32
    %179 = arith.cmpi ne, %178, %c0_i32_95 : i32
    scf.if %179 {
      %c0_96 = arith.constant 0 : index
      %c0_97 = arith.constant 0 : index
      %c0_98 = arith.constant 0 : index
      %180 = vector.load %arg5[%c0_96, %c0_97, %c0_98] : memref<5x1x256xf32, #tpu.memory_space<vmem>>, vector<1x1x256xf32>
      %181 = vector.shape_cast %180 : vector<1x1x256xf32> to vector<1x256xf32>
      %182 = vector.shape_cast %181 : vector<1x256xf32> to vector<1x1x256xf32>
      %cst_99 = arith.constant dense<0.000000e+00> : vector<1xf32>
      %183 = vector.multi_reduction <add>, %182, %cst_99 [1, 2] : vector<1x1x256xf32> to vector<1xf32>
      %184 = vector.shape_cast %183 : vector<1xf32> to vector<1x1x1xf32>
      %185 = vector.extract %184[0, 0, 0] : f32 from vector<1x1x1xf32>
      %c1_100 = arith.constant 1 : index
      %c0_101 = arith.constant 0 : index
      %c0_102 = arith.constant 0 : index
      %186 = vector.load %arg5[%c1_100, %c0_101, %c0_102] : memref<5x1x256xf32, #tpu.memory_space<vmem>>, vector<1x1x256xf32>
      %187 = vector.shape_cast %186 : vector<1x1x256xf32> to vector<1x256xf32>
      %188 = vector.shape_cast %187 : vector<1x256xf32> to vector<1x1x256xf32>
      %cst_103 = arith.constant dense<0.000000e+00> : vector<1xf32>
      %189 = vector.multi_reduction <add>, %188, %cst_103 [1, 2] : vector<1x1x256xf32> to vector<1xf32>
      %190 = vector.shape_cast %189 : vector<1xf32> to vector<1x1x1xf32>
      %191 = vector.extract %190[0, 0, 0] : f32 from vector<1x1x1xf32>
      %c2_104 = arith.constant 2 : index
      %c0_105 = arith.constant 0 : index
      %c0_106 = arith.constant 0 : index
      %192 = vector.load %arg5[%c2_104, %c0_105, %c0_106] : memref<5x1x256xf32, #tpu.memory_space<vmem>>, vector<1x1x256xf32>
      %193 = vector.shape_cast %192 : vector<1x1x256xf32> to vector<1x256xf32>
      %194 = vector.shape_cast %193 : vector<1x256xf32> to vector<1x1x256xf32>
      %cst_107 = arith.constant dense<0.000000e+00> : vector<1xf32>
      %195 = vector.multi_reduction <add>, %194, %cst_107 [1, 2] : vector<1x1x256xf32> to vector<1xf32>
      %196 = vector.shape_cast %195 : vector<1xf32> to vector<1x1x1xf32>
      %197 = vector.extract %196[0, 0, 0] : f32 from vector<1x1x1xf32>
      %c3_108 = arith.constant 3 : index
      %c0_109 = arith.constant 0 : index
      %c0_110 = arith.constant 0 : index
      %198 = vector.load %arg5[%c3_108, %c0_109, %c0_110] : memref<5x1x256xf32, #tpu.memory_space<vmem>>, vector<1x1x256xf32>
      %199 = vector.shape_cast %198 : vector<1x1x256xf32> to vector<1x256xf32>
      %200 = vector.shape_cast %199 : vector<1x256xf32> to vector<1x1x256xf32>
      %cst_111 = arith.constant dense<0.000000e+00> : vector<1xf32>
      %201 = vector.multi_reduction <add>, %200, %cst_111 [1, 2] : vector<1x1x256xf32> to vector<1xf32>
      %202 = vector.shape_cast %201 : vector<1xf32> to vector<1x1x1xf32>
      %203 = vector.extract %202[0, 0, 0] : f32 from vector<1x1x1xf32>
      %c4_112 = arith.constant 4 : index
      %c0_113 = arith.constant 0 : index
      %c0_114 = arith.constant 0 : index
      %204 = vector.load %arg5[%c4_112, %c0_113, %c0_114] : memref<5x1x256xf32, #tpu.memory_space<vmem>>, vector<1x1x256xf32>
      %205 = vector.shape_cast %204 : vector<1x1x256xf32> to vector<1x256xf32>
      %206 = vector.shape_cast %205 : vector<1x256xf32> to vector<1x1x256xf32>
      %cst_115 = arith.constant dense<0.000000e+00> : vector<1xf32>
      %207 = vector.multi_reduction <add>, %206, %cst_115 [1, 2] : vector<1x1x256xf32> to vector<1xf32>
      %208 = vector.shape_cast %207 : vector<1xf32> to vector<1x1x1xf32>
      %209 = vector.extract %208[0, 0, 0] : f32 from vector<1x1x1xf32>
      %210 = tpu.iota {dimensions = array<i32: 0>} : vector<8x128xi32>
      %c0_i32_116 = arith.constant 0 : i32
      %211 = vector.broadcast %c0_i32_116 : i32 to vector<8x128xi32>
      %212 = arith.cmpi eq, %210, %211 : vector<8x128xi32>
      %213 = vector.broadcast %185 : f32 to vector<8x128xf32>
      %cst_117 = arith.constant 0.000000e+00 : f32
      %214 = vector.broadcast %cst_117 : f32 to vector<8x128xf32>
      %215 = arith.select %212, %213, %214 : vector<8x128xi1>, vector<8x128xf32>
      %c1_i32 = arith.constant 1 : i32
      %216 = vector.broadcast %c1_i32 : i32 to vector<8x128xi32>
      %217 = arith.cmpi eq, %210, %216 : vector<8x128xi32>
      %218 = vector.broadcast %191 : f32 to vector<8x128xf32>
      %cst_118 = arith.constant 0.000000e+00 : f32
      %219 = vector.broadcast %cst_118 : f32 to vector<8x128xf32>
      %220 = arith.select %217, %218, %219 : vector<8x128xi1>, vector<8x128xf32>
      %221 = arith.addf %215, %220 : vector<8x128xf32>
      %c2_i32 = arith.constant 2 : i32
      %222 = vector.broadcast %c2_i32 : i32 to vector<8x128xi32>
      %223 = arith.cmpi eq, %210, %222 : vector<8x128xi32>
      %224 = vector.broadcast %197 : f32 to vector<8x128xf32>
      %cst_119 = arith.constant 0.000000e+00 : f32
      %225 = vector.broadcast %cst_119 : f32 to vector<8x128xf32>
      %226 = arith.select %223, %224, %225 : vector<8x128xi1>, vector<8x128xf32>
      %227 = arith.addf %221, %226 : vector<8x128xf32>
      %c3_i32 = arith.constant 3 : i32
      %228 = vector.broadcast %c3_i32 : i32 to vector<8x128xi32>
      %229 = arith.cmpi eq, %210, %228 : vector<8x128xi32>
      %230 = vector.broadcast %203 : f32 to vector<8x128xf32>
      %cst_120 = arith.constant 0.000000e+00 : f32
      %231 = vector.broadcast %cst_120 : f32 to vector<8x128xf32>
      %232 = arith.select %229, %230, %231 : vector<8x128xi1>, vector<8x128xf32>
      %233 = arith.addf %227, %232 : vector<8x128xf32>
      %c4_i32 = arith.constant 4 : i32
      %234 = vector.broadcast %c4_i32 : i32 to vector<8x128xi32>
      %235 = arith.cmpi eq, %210, %234 : vector<8x128xi32>
      %236 = vector.broadcast %209 : f32 to vector<8x128xf32>
      %cst_121 = arith.constant 0.000000e+00 : f32
      %237 = vector.broadcast %cst_121 : f32 to vector<8x128xf32>
      %238 = arith.select %235, %236, %237 : vector<8x128xi1>, vector<8x128xf32>
      %239 = arith.addf %233, %238 : vector<8x128xf32>
      %c0_122 = arith.constant 0 : index
      %c0_123 = arith.constant 0 : index
      %c0_124 = arith.constant 0 : index
      %240 = vector.load %arg4[%c0_122, %c0_123, %c0_124] : memref<1x8x128xf32, #tpu.memory_space<vmem>>, vector<1x8x128xf32>
      %241 = vector.shape_cast %240 : vector<1x8x128xf32> to vector<8x128xf32>
      %242 = vector.shape_cast %239 : vector<8x128xf32> to vector<1x8x128xf32>
      tpu.vector_store %arg4[%c0_122, %c0_123, %c0_124], %242 {strides = array<i32>} : memref<1x8x128xf32, #tpu.memory_space<vmem>>, vector<1x8x128xf32>,
    } else {
    }
    return
  }
  func.func @transform_0(%arg0: i32, %arg1: i32) -> (i32, i32, i32, i32) {
    %c0_i32 = arith.constant 0 : i32
    %c0_i32_0 = arith.constant 0 : i32
    %c0_i32_1 = arith.constant 0 : i32
    return %arg0, %c0_i32, %arg1, %c0_i32_0 : i32, i32, i32, i32
  }
  func.func @transform_1(%arg0: i32, %arg1: i32) -> (i32, i32, i32, i32) {
    %c0_i32 = arith.constant 0 : i32
    %c0_i32_0 = arith.constant 0 : i32
    %c0_i32_1 = arith.constant 0 : i32
    return %arg0, %c0_i32, %arg1, %c0_i32_0 : i32, i32, i32, i32
  }
  func.func @transform_2(%arg0: i32, %arg1: i32) -> (i32, i32, i32) {
    %c0_i32 = arith.constant 0 : i32
    %c0_i32_0 = arith.constant 0 : i32
    %c0_i32_1 = arith.constant 0 : i32
    return %arg0, %c0_i32, %c0_i32_0 : i32, i32, i32
  }
}

</mosaic_0001>

<bundles_post_ra>
// kernel: tpu_custom_call.1
= control target key start
LH: loop header
LB: loop body
LE: loop exit
PB: predicated region body
PF: predicated region fallthrough
CT: control target
= control target key end

     0   :  { %7 = vsyncpa [#allocation4], 0  ;;  %s1396_s0 = inlined_call_operand.hbm [shape: f32[2,4,1,256], index: 0, kind: input, shape index: {}]   ;;  %s1397_s1 = inlined_call_operand.hbm [shape: f32[2,4,1,256], index: 1, kind: input, shape index: {}]   ;;  %s1398_s2 = inlined_call_operand.hbm [shape: f32[2,8,128], index: 2, kind: output, shape index: {}]  }
   0x1   :  { %9 = vsyncpa [#allocation4 + $0x1], 0 }
   0x2   :  { %10 = vsyncpa [#allocation7], 0 }
   0x3   :  { %12 = vsyncpa [#allocation7 + $0x1], 0 }
   0x4   :  { %13 = vsyncpa [#allocation5], 0 }
   0x5   :  { %15 = vsyncpa [#allocation5 + $0x1], 0  ;;  %s988_s9 = smov 0   ;;  %s990_s10 = smov 0  }
   0x6   :  { %s992_s11 = smov 0   ;;  %s994_s12 = smov 0  }
   0x7   :  { %s996_s13 = smov 0   ;;  %s998_s14 = smov 0  }
   0x8 LB: > { %s679_s15 = sadd.s32 4294967295, %s965_s14   ;;  %s680_s16 = sadd.s32 4294967294, %s965_s14   ;;  %s965_s14 = sphi %s998_s14, %s21_s14   ;;  %s961_s13 = sphi %s996_s13, %s1426_s13   ;;  %s957_s12 = sphi %s994_s12, %s1425_s12   ;;  %s953_s11 = sphi %s992_s11, %s1424_s11   ;;  %s949_s10 = sphi %s990_s10, %s1423_s10   ;;  %s945_s9 = sphi %s988_s9, %s1422_s9  }
   0x9   : > { %s33_s17 = sadd.s32 1, %s961_s13  ;;  %s42_s18 = sadd.s32 1, %s953_s11 }
   0xa   : > { %p35_p0 = scmp.ge.s32.totalorder %s33_s17, 2  ;;  %p49_p1 = scmp.ne.s32.totalorder %s953_s11, %s949_s10 }
   0xb   : > { %p50_p2 = scmp.eq.s32.totalorder %s965_s14, 0  ;;  %p55_p3 = scmp.ne.s32.totalorder %s949_s10, %s945_s9 }
   0xc   : > { %s1428_s17 = smov (%p35_p0, %s33_s17), 0  ;;  %p56_p5 = scmp.eq.s32.totalorder %s679_s15, 0 }
   0xd   : > { %p1029_p4 = por %p50_p2, %p49_p1  ;;  %s37_s20 = ssub.s32 %s961_s13, %s1428_s17 }
   0xe   : > { %p107_p6 = scmp.eq.s32.totalorder %s679_s15, 1  ;;  %p40_p7 = scmp.eq.s32.totalorder %s37_s20, 0 }
   0xf   : > { %p1035_p8 = por %p56_p5, %p55_p3  ;;  %p113_p10 = scmp.eq.s32.totalorder %s680_s16, 1 }
  0x10   : > { %p1039_p9 = por %p107_p6, %p49_p1  ;;  %p732_p13 = scmp.lt.s32.totalorder %s965_s14, 2 }
  0x11   : > { %s1402_s21 = scalar_select %p1035_p8, 1, 0 }
  0x12   : > { %s1403_s22 = scalar_select %p1039_p9, 1, 0 }
  0x13   : > { %s1044_s23 = scalar_select %p40_p7, %s953_s11, %s42_s18  }
  0x14   : > { %p1046_p11 = por %p113_p10, %p55_p3  ;;  %s1053_s25 = sand.u32 1, %s953_s11  }
  0x15   : > { %s683_s26 = sshll.u32 %s1053_s25, 3  ;;  %s703_s27 = sshll.u32 %s961_s13, 7 }
  0x16   : > { %s1404_s24 = scalar_select %p1046_p11, 1, 0 }
  0x17   : > { %s1062_s30 = scalar_lea.hbm %s1396_s0, %s703_s27  ;;  %s137_s3 = scalar_lea.vmem [#allocation3], %s683_s26 }
  0x18   : > { %s146_s4 = sshll.u32 %s137_s3, 4  ;;  %p1070_p0 = pnand %p732_p13, %p1029_p4  ;;  %s1066_s4 = int_to_ptr.vmem [resolvable:$true] %s146_s4 }
  0x19   : > { %s134_s6 = scalar_lea.sflag [#allocation4], %s1053_s25  ;;  %s819_s7 = scalar_lea.hbm %s1062_s30, 128 }
  0x1a   : > { %p820_p2 = scmp.ne.s32.totalorder %s1062_s30, %s819_s7  ;;  %p821_p3 = pneg %p1070_p0 }
  0x1b   : > { %s824_s16 = scalar_lea.hbm %s1396_s0, 256  ;;  %p825_p4 = scmp.lt.u32.totalorder %s1062_s30, %s1396_s0 }
  0x1c   : > { %p822_p5 = pnand %p821_p3, %p820_p2  ;;  %p826_p7 = scmp.lt.u32.totalorder %s824_s16, %s819_s7 }
  0x1d   : > { %p828_p13 = scmp.lt.u32.totalorder %s819_s7, %s1062_s30 }
  0x1e   : > { %p823_p6 = pneg %p822_p5  ;;  %p827_p10 = por %p826_p7, %p825_p4 }
  0x20   : > { %p829_p12 = por %p828_p13, %p827_p10 }
  0x22   : > { %p830_p1 = pnand %p829_p12, %p823_p6 }
  0x24   : > { %833 = shalt.err (!%p830_p1)
}
  0x25   : > { %s834_s20 = scalar_lea.vmem %s1066_s4, 128  ;;  %s967_s28 = smov [#allocation3]  }
  0x26   : > { %p835_p2 = scmp.ne.s32.totalorder %s1066_s4, %s834_s20  ;;  %s839_s29 = sshll.u32 %s967_s28, 4  ;;  %s840_s29 = int_to_ptr.vmem [resolvable:$false] %s839_s29 }
  0x27   : > { %s841_s3 = scalar_lea.vmem %s840_s29, 256  ;;  %p842_p9 = scmp.lt.s32.totalorder %s1066_s4, %s840_s29 }
  0x28   : > { %p837_p5 = pnand %p835_p2, %p821_p3  ;;  %p843_p4 = scmp.lt.s32.totalorder %s841_s3, %s834_s20 }
  0x2a   : > { %p838_p11 = pneg %p837_p5  ;;  %p844_p7 = por %p843_p4, %p842_p9 }
  0x2c   : > { %p845_p10 = pnand %p844_p7, %p838_p11 }
  0x2e   : > { %848 = shalt.err (!%p845_p10)
}
  0x2f   : > { %s968_s7 = smov 32   ;;  %s969_s8 = smov 2  }
  0x30   : > { %724 = dma.hbm_to_vmem [thread:$0]  (!%p1070_p0), %s1062_s30, 128, %s1066_s4, %s134_s6, %s968_s7, %s968_s7, %s969_s8  }
  0x31   : > { %p177_p9 = scmp.lt.s32.totalorder %s965_s14, 3  ;;  %s1112_s18 = scalar_lea.hbm %s1397_s1, %s703_s27 }
  0x32   : > { %p1406_p11 = scmp.ge.s32.totalorder %s965_s14, 1  ;;  %s160_s20 = scalar_lea.vmem [#allocation6], %s683_s26 }
  0x33   : > { %s169_s28 = sshll.u32 %s160_s20, 4  ;;  %s157_s30 = scalar_lea.sflag [#allocation7], %s1053_s25  ;;  %s1122_s28 = int_to_ptr.vmem [resolvable:$true] %s169_s28 }
  0x34   : > { %p1116_p12 = pnand %p1406_p11, %p177_p9  ;;  %s849_s4 = scalar_lea.hbm %s1112_s18, 128 }
  0x35   : > { %p850_p1 = scmp.ne.s32.totalorder %s1112_s18, %s849_s4  ;;  %s854_s29 = scalar_lea.hbm %s1397_s1, 256 }
  0x36   : > { %p855_p2 = scmp.lt.u32.totalorder %s1112_s18, %s1397_s1  ;;  %p856_p5 = scmp.lt.u32.totalorder %s854_s29, %s849_s4 }
  0x37   : > { %p852_p6 = pnand %p850_p1, %p821_p3  ;;  %p858_p7 = scmp.lt.u32.totalorder %s849_s4, %s1112_s18 }
  0x38   : > { %p857_p4 = por %p856_p5, %p855_p2 }
  0x39   : > { %p853_p13 = pneg %p852_p6 }
  0x3a   : > { %p859_p10 = por %p858_p7, %p857_p4 }
  0x3c   : > { %p860_p9 = pnand %p859_p10, %p853_p13 }
  0x3e   : > { %863 = shalt.err (!%p860_p9)
}
  0x3f   : > { %s864_s26 = scalar_lea.vmem %s1122_s28, 128  ;;  %s970_s16 = smov [#allocation6]  }
  0x40   : > { %p865_p11 = scmp.ne.s32.totalorder %s1122_s28, %s864_s26  ;;  %s869_s20 = sshll.u32 %s970_s16, 4  ;;  %s870_s20 = int_to_ptr.vmem [resolvable:$false] %s869_s20 }
  0x41   : > { %s871_s27 = scalar_lea.vmem %s870_s20, 256  ;;  %p872_p8 = scmp.lt.s32.totalorder %s1122_s28, %s870_s20 }
  0x42   : > { %p867_p1 = pnand %p865_p11, %p821_p3  ;;  %p873_p2 = scmp.lt.s32.totalorder %s871_s27, %s864_s26 }
  0x44   : > { %p868_p6 = pneg %p867_p1  ;;  %p874_p5 = por %p873_p2, %p872_p8 }
  0x46   : > { %p875_p4 = pnand %p874_p5, %p868_p6 }
  0x48   : > { %878 = shalt.err (!%p875_p4)
}
  0x49   : > { %727 = dma.hbm_to_vmem [thread:$0]  (!%p1070_p0), %s1112_s18, 128, %s1122_s28, %s157_s30, %s968_s7, %s968_s7, %s969_s8  }
  0x4a   : > { %181 = sbr.rel (%p1116_p12) target bundleno = 388 (0x184), region = 28  ;;  %s1156_s4 = sand.u32 (!%p1116_p12), 1, %s949_s10  }
  0x4b   : > { %s1159_s6 = sshll.u32 (!%p1116_p12), %s1156_s4, 3  ;;  %s184_s5 = scalar_lea.sflag (!%p1116_p12), [#allocation4], %s1156_s4 }
  0x4c   : > { %s187_s29 = scalar_lea.vmem (!%p1116_p12), [#allocation3], %s1159_s6  ;;  %p1408_p8 = scmp.ne.s32.totalorder (!%p1116_p12), %s1402_s21, 0 }
  0x51   : > { %932 = dma.done.wait (%p1408_p8), %s184_s5, 128  }
  0x52   : > { %934 = vsyncadd (%p1408_p8), %s184_s5, 4294967168  ;;  %s193_s25 = scalar_lea.sflag [#allocation7], %s1156_s4  ;;  %s1169_s7 = scalar_lea.vmem [#allocation6], %s1159_s6 }
  0x53   : > { %936 = dma.done.wait (%p1408_p8), %s193_s25, 128  }
  0x54   : > { %938 = vsyncadd (%p1408_p8), %s193_s25, 4294967168  ;;  %v226_v0 = vlaneseq  ;;  %v971_v2 = vmov 0.0   ;;  %v1190_v3 = vld [vmem:[%s187_s29] sm:$0x3]  ;;  %v1192_v4 = vld [vmem:[%s187_s29 + $0x2] sm:$0x3] }
  0x55   : > { %v1194_v5 = vld [vmem:[%s187_s29 + $0x4] sm:$0x3]  ;;  %v1196_v6 = vld [vmem:[%s187_s29 + $0x6] sm:$0x3]  ;;  %v246_v7 = vand.u32 2147483647, %v1190_v3  ;;  %v238_v15 = vmax.f32 %v1190_v3, %v1192_v4 }
  0x56   : > { %vm1176_vm0 = vcmp.lt.s32.totalorder %v226_v0, 256  ;;  %v281_v8 = vand.u32 2147483647, %v1192_v4  ;;  %v316_v10 = vand.u32 2147483647, %v1194_v5  ;;  %vm267_vm1 = vcmp.ge.f32.partialorder %v1190_v3, 0.0 }
  0x57   : > { %232 = vst.msk [vmem:[#allocation2 + $0x4] sm:$0x3] %vm1176_vm0, %v971_v2  ;;  %230 = vst.msk [vmem:[#allocation2] sm:$0x3] %vm1176_vm0, %v971_v2  ;;  %v247_v9 = vsub.f32 0.0, %v246_v7  ;;  %v241_v22 = vmax.f32 %v238_v15, %v1194_v5  ;;  %vm302_vm2 = vcmp.ge.f32.partialorder %v1192_v4, 0.0 }
  0x58   : > { %231 = vst.msk [vmem:[#allocation2 + $0x2] sm:$0x3] %vm1176_vm0, %v971_v2  ;;  %233 = vst.msk [vmem:[#allocation2 + $0x6] sm:$0x3] %vm1176_vm0, %v971_v2  ;;  %v282_v11 = vsub.f32 0.0, %v281_v8  ;;  %v317_v14 = vsub.f32 0.0, %v316_v10 }
  0x59   : > { %234 = vst.msk [vmem:[#allocation2 + $0x8] sm:$0x3] %vm1176_vm0, %v971_v2  ;;  %v351_v12 = vand.u32 2147483647, %v1196_v6  ;;  %v248_v13 = vmul.f32 1.442695, %v247_v9  ;;  %v1217_v25 = vmax.f32 %v241_v22, %v1196_v6 }
  0x5a   : > { %v283_v16 = vmul.f32 1.442695, %v282_v11  ;;  %v318_v18 = vmul.f32 1.442695, %v317_v14  ;;  %v1205_v19 = vld [vmem:[%s1169_s7] sm:$0x3] }
  0x5b   : > { %v352_v17 = vsub.f32 0.0, %v351_v12  ;;  %785 = vpow2.f32 %v248_v13  ;;  %v1208_v20 = vld [vmem:[%s1169_s7 + $0x2] sm:$0x3]  ;;  %v1214_v24 = vld [vmem:[%s1169_s7 + $0x4] sm:$0x3]  ;;  %v275_v29 = vsub.f32 %v1190_v3, %v1217_v25  ;;  %v310_v30 = vsub.f32 %v1192_v4, %v1217_v25  ;;  %s700_s30 = sshll.u32 %s957_s12, 7 }
  0x5c   : > { %787 = vpow2.f32 %v283_v16  ;;  %v308_v23 = vadd.f32 %v1208_v20, %v1205_v19  ;;  %v1221_v27 = vld [vmem:[%s1169_s7 + $0x6] sm:$0x3]  ;;  %v345_v31 = vsub.f32 %v1194_v5, %v1217_v25  ;;  %v380_v44 = vsub.f32 %v1196_v6, %v1217_v25  ;;  %s221_s3 = scalar_lea.vmem [#allocation8], %s1159_s6  ;;  %s1347_s20 = scalar_lea.hbm %s1398_s2, %s700_s30 }
  0x5d   : > { %v353_v21 = vmul.f32 1.442695, %v352_v17  ;;  %789 = vpow2.f32 %v318_v18  ;;  %v276_v33 = vmul.f32 1.442695, %v275_v29  ;;  %v311_v34 = vmul.f32 1.442695, %v310_v30 }
  0x5e   : > { %v343_v26 = vadd.f32 %v1214_v24, %v308_v23  ;;  %v346_v35 = vmul.f32 1.442695, %v345_v31  ;;  %v1244_v46 = vmul.f32 %v1205_v19, %v1190_v3  ;;  %v1248_v48 = vmul.f32 %v1208_v20, %v1192_v4  ;;  %s572_s15 = sshll.u32 %s221_s3, 4  ;;  %s559_s27 = scalar_lea.sflag [#allocation5], %s1156_s4  ;;  %s1349_s15 = int_to_ptr.vmem [resolvable:$true] %s572_s15 }
  0x5f   : > { %791 = vpow2.f32 %v353_v21  ;;  %vm337_vm3 = vcmp.ge.f32.partialorder %v1194_v5, 0.0  ;;  %v1253_v50 = vmul.f32 %v1214_v24, %v1194_v5  ;;  %v381_v51 = vmul.f32 1.442695, %v380_v44  ;;  %s879_s5 = scalar_lea.vmem %s1349_s15, 128  ;;  %p1419_p3 = scmp.ne.s32.totalorder %s1403_s22, 0 }
  0x60   : > { %v409_v28 = vld [vmem:[#allocation2 + $0x8] sm:$0x3]  ;;  %v1230_v32 = vadd.f32 %v1221_v27, %v343_v26  ;;  %793 = vpow2.f32 %v276_v33  ;;  %v250_v52 = vmax.f32 %v1190_v3, 0.0  ;;  %v1258_v54 = vmul.f32 %v1221_v27, %v1196_v6  ;;  %p880_p0 = scmp.ne.s32.totalorder %s1349_s15, %s879_s5  ;;  %s972_s12 = smov [#allocation8]  }
  0x61   : > { %795 = vpow2.f32 %v311_v34  ;;  %v285_v55 = vmax.f32 %v1192_v4, 0.0  ;;  %v320_v56 = vmax.f32 %v1194_v5, 0.0  ;;  %v355_v57 = vmax.f32 %v1196_v6, 0.0  ;;  %s883_s6 = sshll.u32 %s972_s12, 4  ;;  %s884_s6 = int_to_ptr.vmem [resolvable:$false] %s883_s6 }
  0x62   : > { %v410_v36 = vadd.f32 %v409_v28, %v1230_v32  ;;  %797 = vpow2.f32 %v346_v35  ;;  %vm372_vm4 = vcmp.ge.f32.partialorder %v1196_v6, 0.0  ;;  %v252_v9 = vsub.f32 %v250_v52, %v1244_v46  ;;  %p881_p12 = pnand %p880_p0, %p1419_p3  ;;  %s885_s29 = scalar_lea.vmem %s884_s6, 256 }
  0x63   : > { %v287_v13 = vsub.f32 %v285_v55, %v1248_v48  ;;  %v322_v14 = vsub.f32 %v320_v56, %v1253_v50  ;;  %v357_v15 = vsub.f32 %v355_v57, %v1258_v54  ;;  %v309_v22 = vadd.f32 %v1248_v48, %v1244_v46  ;;  %p886_p7 = scmp.lt.s32.totalorder %s1349_s15, %s884_s6  ;;  %p887_p10 = scmp.lt.s32.totalorder %s885_s29, %s879_s5 }
  0x64   : > { %411 = vst.msk [vmem:[#allocation2 + $0x8] sm:$0x3] %vm1176_vm0, %v410_v36  ;;  %vm427_vm9 = vcmask 1040384   ;;  %p882_p13 = pneg %p881_p12 }
  0x65   : > { %v786_v37 = vpop.eup %785  ;;  %p888_p9 = por %p887_p10, %p886_p7 }
  0x66   : > { %v788_v38 = vpop.eup %787  ;;  %v253_v39 = vadd.f32 1.0, %v786_v37  ;;  %v256_v47 = vmul.f32 -0.5, %v786_v37  ;;  %v259_v60 = vand.u32 2147483647, %v786_v37 }
  0x67   : > { %v790_v40 = vpop.eup %789  ;;  %v288_v41 = vadd.f32 1.0, %v788_v38  ;;  %v291_v49 = vmul.f32 -0.5, %v788_v38  ;;  %v294_v61 = vand.u32 2147483647, %v788_v38  ;;  %p889_p11 = pnand %p888_p9, %p882_p13 }
  0x68   : > { %799 = vrcp.f32 %v253_v39  ;;  %v323_v43 = vadd.f32 1.0, %v790_v40  ;;  %v326_v53 = vmul.f32 -0.5, %v790_v40  ;;  %v257_v59 = vadd.f32 1.0, %v256_v47 }
  0x69   : > { %v1235_v42 = vpop.eup %791  ;;  %801 = vrcp.f32 %v288_v41  ;;  %v292_v63 = vadd.f32 1.0, %v291_v49  ;;  %v329_v2 = vand.u32 2147483647, %v790_v40  ;;  %vm1270_vm5 = vcmp.lt.f32.partialorder %v259_v60, 0.0004427343 }
  0x6a   : > { %v358_v45 = vadd.f32 1.0, %v1235_v42  ;;  %803 = vrcp.f32 %v323_v43  ;;  %v794_v58 = vpop.eup %793  ;;  %v361_v7 = vmul.f32 -0.5, %v1235_v42  ;;  %v327_v10 = vadd.f32 1.0, %v326_v53 }
  0x6b   : > { %v796_v62 = vpop.eup %795  ;;  %v364_v11 = vand.u32 2147483647, %v1235_v42  ;;  %v258_v21 = vmul.f32 %v786_v37, %v257_v59  ;;  %vm1274_vm6 = vcmp.lt.f32.partialorder %v294_v61, 0.0004427343  ;;  %v293_v29 = vmul.f32 %v788_v38, %v292_v63  ;;  %v405_v63 = vld [vmem:[#allocation2 + $0x6] sm:$0x3] }
  0x6c   : > { %805 = vrcp.f32 %v358_v45  ;;  %v798_v8 = vpop.eup %797  ;;  %v313_v16 = vadd.f32 %v796_v62, %v794_v58  ;;  %vm1278_vm7 = vcmp.lt.f32.partialorder %v329_v2, 0.0004427343  ;;  %v362_v31 = vadd.f32 1.0, %v361_v7  ;;  %v401_v7 = vld [vmem:[#allocation2 + $0x4] sm:$0x3] }
  0x6d   : > { %807 = vlog2.f32 %v253_v39  ;;  %v328_v36 = vmul.f32 %v790_v40, %v327_v10  ;;  %vm1284_vm8 = vcmp.lt.f32.partialorder %v364_v11, 0.0004427343 }
  0x6e   : > { %809 = vlog2.f32 %v288_v41  ;;  %v348_v44 = vadd.f32 %v798_v8, %v313_v16  ;;  %v363_v4 = vmul.f32 %v1235_v42, %v362_v31 }
  0x6f   : > { %811 = vlog2.f32 %v323_v43 }
  0x70   : > { %813 = vlog2.f32 %v358_v45 }
  0x71   : > { %815 = vpow2.f32 %v381_v51 }
  0x72   : > { %v800_v12 = vpop.eup %799 }
  0x73   : > { %v802_v17 = vpop.eup %801  ;;  %v268_v18 = vmul.f32 %v800_v12, %v786_v37 }
  0x74   : > { %v804_v26 = vpop.eup %803  ;;  %v303_v28 = vmul.f32 %v802_v17, %v788_v38 }
  0x75   : > { %v269_v34 = vsel %vm267_vm1, %v800_v12, %v268_v18  ;;  %v338_v35 = vmul.f32 %v804_v26, %v790_v40 }
  0x76   : > { %v806_v33 = vpop.eup %805  ;;  %v270_v41 = vmul.f32 %v269_v34, %v1205_v19  ;;  %v304_v38 = vsel %vm302_vm2, %v802_v17, %v303_v28  ;;  %v344_v28 = vadd.f32 %v1253_v50, %v309_v22 }
  0x77   : > { %v808_v39 = vpop.eup %807  ;;  %v373_v43 = vmul.f32 %v806_v33, %v1235_v42  ;;  %v305_v47 = vmul.f32 %v1208_v20, %v304_v38  ;;  %v339_v3 = vsel %vm337_vm3, %v804_v26, %v338_v35  ;;  %v307_v49 = vadd.f32 %v304_v38, %v269_v34 }
  0x78   : > { %v810_v45 = vpop.eup %809  ;;  %v255_v40 = vmul.f32 0.6931472, %v808_v39  ;;  %v340_v52 = vmul.f32 %v1214_v24, %v339_v3  ;;  %v379_v46 = vadd.f32 %v1258_v54, %v344_v28 }
  0x79   : > { %v812_v51 = vpop.eup %811  ;;  %v374_v19 = vsel %vm372_vm4, %v806_v33, %v373_v43  ;;  %v290_v53 = vmul.f32 0.6931472, %v810_v45  ;;  %v306_v56 = vadd.f32 %v305_v47, %v270_v41  ;;  %v342_v61 = vadd.f32 %v339_v3, %v307_v49  ;;  %v397_v3 = vld [vmem:[#allocation2 + $0x2] sm:$0x3] }
  0x7a   : > { %v814_v55 = vpop.eup %813  ;;  %v375_v57 = vmul.f32 %v1221_v27, %v374_v19  ;;  %v261_v20 = vsel %vm1270_vm5, %v258_v21, %v255_v40  ;;  %v325_v5 = vmul.f32 0.6931472, %v812_v51  ;;  %v389_v21 = vld [vmem:[#allocation2] sm:$0x3] }
  0x7b   : > { %v816_v58 = vpop.eup %815  ;;  %v262_v59 = vadd.f32 %v261_v20, %v252_v9  ;;  %v296_v60 = vsel %vm1274_vm6, %v293_v29, %v290_v53  ;;  %v360_v24 = vmul.f32 0.6931472, %v814_v55  ;;  %v341_v6 = vadd.f32 %v340_v52, %v306_v56 }
  0x7c   : > { %v297_v62 = vadd.f32 %v296_v60, %v287_v13  ;;  %v331_v42 = vsel %vm1278_vm7, %v328_v36, %v325_v5  ;;  %v383_v2 = vadd.f32 %v816_v58, %v348_v44  ;;  %v377_v10 = vadd.f32 %v374_v19, %v342_v61  ;;  %v512_v19 = vld [vmem:[#allocation2 + $0x8] sm:$0x3] }
  0x7d   : > { %v332_v27 = vadd.f32 %v331_v42, %v322_v14  ;;  %v366_v8 = vsel %vm1284_vm8, %v363_v4, %v360_v24  ;;  %v376_v11 = vadd.f32 %v375_v57, %v341_v6  ;;  %v1313_v13 = vshrl.u32 %v226_v0, 7 }
  0x7e   : > { %v298_v9 = vadd.f32 %v297_v62, %v262_v59  ;;  %v367_v12 = vadd.f32 %v366_v8, %v357_v15  ;;  %817 = vlog2.f32 %v383_v2  ;;  %v406_v16 = vadd.f32 %v405_v63, %v377_v10 }
  0x7f   : > { %v402_v17 = vadd.f32 %v401_v7, %v376_v11  ;;  %v419_v15 = vsub.s32 0, %v1313_v13  ;;  %v423_v26 = vsub.s32 1, %v1313_v13  ;;  %vm538_vm10 = vcmp.eq.s32.totalorder %v1313_v13, 0 }
  0x80   : > { %v333_v18 = vadd.f32 %v332_v27, %v298_v9  ;;  %407 = vst.msk [vmem:[#allocation2 + $0x6] sm:$0x3] %vm1176_vm0, %v406_v16  ;;  %vm541_vm11 = vcmp.eq.s32.totalorder %v1313_v13, 1  ;;  %vm545_vm12 = vcmp.eq.s32.totalorder %v1313_v13, 2  ;;  %vm549_vm13 = vcmp.eq.s32.totalorder %v1313_v13, 3 }
  0x81   : > { %403 = vst.msk [vmem:[#allocation2 + $0x4] sm:$0x3] %vm1176_vm0, %v402_v17  ;;  %v517_v53 = vrot.slane %v512_v19, %v419_v15  ;;  %vm553_vm14 = vcmp.eq.s32.totalorder %v1313_v13, 4 }
  0x82   : > { %v368_v14 = vadd.f32 %v367_v12, %v333_v18 }
  0x83   : > { %v524_v5 = vsel %vm427_vm9, %v517_v53, 0.0 }
  0x84   : > { %v390_v23 = vadd.f32 %v389_v21, %v368_v14 }
  0x86   : > { %395 = vst.msk [vmem:[#allocation2] sm:$0x3] %vm1176_vm0, %v390_v23 }
  0x87   : > { %v488_v30 = vld [vmem:[#allocation2 + $0x6] sm:$0x3] }
  0x88   : > { %v818_v29 = vpop.eup %817  ;;  %v464_v31 = vld [vmem:[#allocation2 + $0x4] sm:$0x3]  ;;  %v493_v0 = vrot.slane %v488_v30, %v419_v15  ;;  %v497_v33 = vrot.slane %v488_v30, %v423_v26 }
  0x89   : > { %v385_v34 = vmul.f32 0.6931472, %v818_v29  ;;  %v469_v35 = vrot.slane %v464_v31, %v419_v15  ;;  %v473_v36 = vrot.slane %v464_v31, %v423_v26 }
  0x8a   : > { %v500_v41 = vsel %vm427_vm9, %v493_v0, 0.0  ;;  %v501_v50 = vsel %vm427_vm9, %v497_v33, 0.0 }
  0x8b   : > { %v386_v48 = vadd.f32 %v385_v34, %v1217_v25  ;;  %v476_v37 = vsel %vm427_vm9, %v469_v35, 0.0  ;;  %v477_v39 = vsel %vm427_vm9, %v473_v36, 0.0  ;;  %v502_v40 = vadd.f32 %v501_v50, %v500_v41 }
  0x8c   : > { %v478_v38 = vadd.f32 %v477_v39, %v476_v37 }
  0x8d   : > { %v415_v43 = vld [vmem:[#allocation2] sm:$0x3]  ;;  %v387_v44 = vmul.f32 %v386_v48, %v1230_v32  ;;  %v521_v32 = vrot.slane %v512_v19, %v423_v26 }
  0x8e   : > { %v420_v45 = vrot.slane %v415_v43, %v419_v15  ;;  %v424_v47 = vrot.slane %v415_v43, %v423_v26  ;;  %479 = vadd.xlane.f32.xlu1 %v478_v38 }
  0x8f   : > { %v388_v54 = vsub.f32 %v387_v44, %v379_v46  ;;  %v525_v58 = vsel %vm427_vm9, %v521_v32, 0.0 }
  0x90   : > { %v428_v25 = vsel %vm427_vm9, %v420_v45, 0.0  ;;  %v429_v49 = vsel %vm427_vm9, %v424_v47, 0.0  ;;  %v526_v60 = vadd.f32 %v525_v58, %v524_v5 }
  0x91   : > { %v430_v51 = vadd.f32 %v429_v49, %v428_v25  ;;  %v398_v52 = vadd.f32 %v397_v3, %v388_v54 }
  0x92   : > { %503 = vadd.xlane.f32.xlu1 %v502_v40 }
  0x93   : > { %431 = vadd.xlane.f32.xlu0 %v430_v51  ;;  %399 = vst.msk [vmem:[#allocation2 + $0x2] sm:$0x3] %vm1176_vm0, %v398_v52 }
  0x9a   : > { %v440_v4 = vld [vmem:[#allocation2 + $0x2] sm:$0x3] }
  0x9b   : > { %v445_v55 = vrot.slane %v440_v4, %v419_v15  ;;  %v449_v56 = vrot.slane %v440_v4, %v423_v26 }
  0x9d   : > { %v452_v57 = vsel %vm427_vm9, %v445_v55, 0.0  ;;  %v453_v20 = vsel %vm427_vm9, %v449_v56, 0.0 }
  0x9e   : > { %v454_v59 = vadd.f32 %v453_v20, %v452_v57 }
  0xa0   : > { %455 = vadd.xlane.f32.xlu0 %v454_v59 }
  0xa4   : > { %527 = vadd.xlane.f32.xlu0 %v526_v60 }
 0x11b   : > { %v480_v1 = vpop.xlane.xlu1 %479 }
 0x11c   : > { %v481_v63 = vrot.slane %v480_v1, 4 }
 0x11e   : > { %v482_v8 = vadd.f32 %v481_v63, %v480_v1 }
 0x11f   : > { %v504_v6 = vpop.xlane.xlu1 %503 }
 0x120   : > { %v432_v24 = vpop.xlane.xlu0 %431  ;;  %v505_v42 = vrot.slane %v504_v6, 4  ;;  %v483_v12 = vrot.slane %v482_v8, 2 }
 0x121   : > { %v433_v61 = vrot.slane %v432_v24, 4 }
 0x122   : > { %v506_v27 = vadd.f32 %v505_v42, %v504_v6  ;;  %v484_v22 = vadd.f32 %v483_v12, %v482_v8 }
 0x123   : > { %v434_v62 = vadd.f32 %v433_v61, %v432_v24 }
 0x124   : > { %v507_v9 = vrot.slane %v506_v27, 2  ;;  %v485_v30 = vrot.slane %v484_v22, 1 }
 0x125   : > { %v435_v2 = vrot.slane %v434_v62, 2 }
 0x126   : > { %v508_v18 = vadd.f32 %v507_v9, %v506_v27  ;;  %v486_v36 = vadd.f32 %v485_v30, %v484_v22 }
 0x127   : > { %v436_v7 = vadd.f32 %v435_v2, %v434_v62 }
 0x128   : > { %v509_v29 = vrot.slane %v508_v18, 1 }
 0x129   : > { %v437_v10 = vrot.slane %v436_v7, 1 }
 0x12a   : > { %v510_v35 = vadd.f32 %v509_v29, %v508_v18 }
 0x12b   : > { %v438_v11 = vadd.f32 %v437_v10, %v436_v7 }
 0x12d   : > { %v456_v16 = vpop.xlane.xlu0 %455  ;;  %705 = vpush %v438_v11 }
 0x12e   : > { %v457_v17 = vrot.slane %v456_v16, 4 }
 0x130   : > { %v458_v21 = vadd.f32 %v457_v17, %v456_v16 }
 0x131   : > { %v528_v14 = vpop.xlane.xlu0 %527 }
 0x132   : > { %v459_v23 = vrot.slane %v458_v21, 2  ;;  %v529_v15 = vrot.slane %v528_v14, 4 }
 0x134   : > { %v530_v26 = vadd.f32 %v529_v15, %v528_v14  ;;  %v460_v28 = vadd.f32 %v459_v23, %v458_v21 }
 0x136   : > { %v531_v31 = vrot.slane %v530_v26, 2  ;;  %v461_v0 = vrot.slane %v460_v28, 1 }
 0x138   : > { %v532_v33 = vadd.f32 %v531_v31, %v530_v26  ;;  %v462_v34 = vadd.f32 %v461_v0, %v460_v28 }
 0x13a   : > { %707 = vpush %v462_v34  ;;  %v533_v46 = vrot.slane %v532_v33, 1 }
 0x13b   : > { %709 = vpush %v486_v36 }
 0x13c   : > { %711 = vpush %v510_v35  ;;  %v534_v48 = vadd.f32 %v533_v46, %v532_v33 }
 0x13e   : > { %713 = vpush %v534_v48 }
 0x15e   : > { %s706_s21 = spop %705 }
 0x15f   : > { %v539_v37 = vstv %s706_s21 }
 0x160   : > { %v540_v41 = vsel %vm538_vm10, %v539_v37, 0.0 }
 0x16b   : > { %s708_s8 = spop %707 }
 0x16c   : > { %v542_v39 = vstv %s708_s8  ;;  %s710_s18 = spop %709 }
 0x16d   : > { %v543_v50 = vsel %vm541_vm11, %v542_v39, 0.0  ;;  %v546_v38 = vstv %s710_s18  ;;  %s712_s19 = spop %711 }
 0x16e   : > { %v544_v43 = vadd.f32 %v543_v50, %v540_v41  ;;  %v550_v44 = vstv %s712_s19  ;;  %v547_v45 = vsel %vm545_vm12, %v546_v38, 0.0 }
 0x16f   : > { %s714_s28 = spop %713  ;;  %v551_v40 = vsel %vm549_vm13, %v550_v44, 0.0 }
 0x170   : > { %v548_v47 = vadd.f32 %v547_v45, %v544_v43  ;;  %v554_v3 = vstv %s714_s28 }
 0x171   : > { %v555_v25 = vsel %vm553_vm14, %v554_v3, 0.0 }
 0x172   : > { %v552_v54 = vadd.f32 %v551_v40, %v548_v47 }
 0x174   : > { %v556_v49 = vadd.f32 %v555_v25, %v552_v54 }
 0x176   : > { %557 = vst [vmem:[%s221_s3] sm:$0xff] %v556_v49 }
 0x177   : > { %892 = shalt.err (!%p889_p11)
}
 0x178   : > { %s893_s4 = scalar_lea.hbm %s1347_s20, 128  ;;  %s897_s21 = scalar_lea.hbm %s1398_s2, 256 }
 0x179   : > { %p894_p1 = scmp.ne.s32.totalorder %s1347_s20, %s893_s4  ;;  %p898_p5 = scmp.lt.u32.totalorder %s1347_s20, %s1398_s2 }
 0x17a   : > { %p899_p4 = scmp.lt.u32.totalorder %s897_s21, %s893_s4  ;;  %p901_p0 = scmp.lt.u32.totalorder %s893_s4, %s1347_s20 }
 0x17b   : > { %p895_p6 = pnand %p894_p1, %p1419_p3 }
 0x17c   : > { %p900_p8 = por %p899_p4, %p898_p5 }
 0x17d   : > { %p896_p2 = pneg %p895_p6 }
 0x17e   : > { %p902_p12 = por %p901_p0, %p900_p8 }
 0x180   : > { %p903_p13 = pnand %p902_p12, %p896_p2 }
 0x182   : > { %906 = shalt.err (!%p903_p13)
}
 0x183   : > { %719 = dma.vmem_to_hbm [thread:$0]  (%p1419_p3), %s1349_s15, 128, %s1347_s20, %s559_s27  }
 0x184 PF: > { %s584_s19 = sand.u32 1, %s945_s9   ;;  %p1420_p7 = scmp.ne.s32.totalorder %s1404_s24, 0 }
 0x185   : > { %p1421_p10 = scmp.ge.s32.totalorder %s965_s14, 2  ;;  %s585_s28 = scalar_lea.sflag [#allocation5], %s584_s19 }
 0x187   : > { %p729_p9 = pnand %p1421_p10, %p1420_p7 }
 0x189   : > { %940 = dma.done.wait (!%p729_p9), %s585_s28, 128  }
 0x18a   : > { %942 = vsyncadd (!%p729_p9), %s585_s28, 4294967168  ;;  %s21_s14 = sadd.s32 1, %s965_s14   ;;  %s1422_s9 = smov %s949_s10 }
 0x18b   : > { %p18_p11 = scmp.ge.s32.totalorder %s21_s14, 4   ;;  %s1423_s10 = smov %s953_s11 }
 0x18c   : > { %s1424_s11 = smov %s1044_s23  ;;  %s1425_s12 = smov %s961_s13 }
 0x18d   : > { %s1426_s13 = smov %s1428_s17  ;;  %20 = sbr.rel (!%p18_p11) target bundleno = 8 (0x8), region = 104 }
 0x194   :  { %590 = vsyncpa [#allocation4], 1 }
 0x195   :  { %592 = vsyncpa [#allocation4 + $0x1], 1 }
 0x196   :  { %593 = vsyncpa [#allocation7], 1 }
 0x197   :  { %595 = vsyncpa [#allocation7 + $0x1], 1 }
 0x198   :  { %596 = vsyncpa [#allocation5], 1 }
 0x199   :  { %598 = vsyncpa [#allocation5 + $0x1], 1 }

</bundles_post_ra>
